<compile_context>
chip_gen: v7x
topology: tpu7x:2x2x1
jax: 0.10.0
libtpu: 0.0.40
codegen_flags: <defaults>
</compile_context>

<pallas_src>
import numpy as np
import jax
import jax.numpy as jnp
from jax.experimental import pallas as pl
from jax.experimental.pallas import tpu as pltpu

LANES = 128
SUBLANES = 8


def _simulate_cache_indices(num_frames, cached_items):
    """Exact Python re-implementation of RunningCache's ring-buffer logic.

    Returns, for every output slot, the input-frame index that
    RunningCache.forward would place there.  num_frames and cached_items must
    be static (trace-time) values.
    """
    duration = abs(min(cached_items)) + 1
    cache = [None] * duration
    index = 0
    o = []
    for i in range(num_frames):
        index = (index + 1) % duration          # set_next(): incr, then store
        cache[index] = i
        for c in cached_items:                  # get(): relative offsets
            o.append(cache[(c + index) % duration])
    if any(oo is None for oo in o):             # None fallback, as in forward()
        o = [oo if oo is not None else o[0] for oo in o]
    assert all(oo is not None for oo in o), (
        "RunningCache.forward would fail here (o[0] is None); cached_items "
        "must contain an offset equivalent to 0 for the first frame.")
    return np.asarray(o, dtype=np.int32)


def _build_fanout_tables(src, num_frames):
    """Invert the gather: for each input frame, which output rows receive it."""
    dests = [[] for _ in range(num_frames)]
    for out_row, s in enumerate(src):
        dests[int(s)].append(out_row)
    max_d = max(1, max(len(d) for d in dests))
    dst = np.zeros((num_frames, max_d), dtype=np.int32)
    cnt = np.zeros((num_frames,), dtype=np.int32)
    for t, d in enumerate(dests):
        cnt[t] = len(d)
        dst[t, : len(d)] = d
    return dst.reshape(-1), cnt, max_d          # flat 1-D table (SMEM-friendly)


def _round_up(a, b):
    return (a + b - 1) // b * b


def _vmem_budget_bytes():
    """Physical VMEM of this generation, with headroom for compiler scratch."""
    cap = None
    try:
        info = pltpu.get_tpu_info()
        cap = int(getattr(info, "vmem_capacity_bytes", 0)) or None
    except Exception:
        cap = None
    if cap is None:
        cap = 64 << 20                           # conservative: v7x per-TC VMEM
    return max(16 << 20, (cap * 3) // 4)         # never request all of VMEM


def running_cache_forward(x, cached_items, *, max_block_bytes=None,
                          small_frame_gather_bytes=256 * 1024):
    """Pallas equivalent of RunningCache.forward for a stacked frame tensor.

    x: (T, ...) stacked frames (e.g. (T, C, H, W)).  T and cached_items must be
    static under jit.  Returns (T * len(cached_items), ...) with same dtype.
    """
    num_frames = x.shape[0]
    feat_shape = x.shape[1:]
    feat = int(np.prod(feat_shape)) if feat_shape else 1
    n_out = num_frames * len(cached_items)
    itemsize = jnp.dtype(x.dtype).itemsize

    src = _simulate_cache_indices(num_frames, cached_items)

    # Tiny frames: a single fused XLA gather beats any per-row-DMA kernel.
    if feat * itemsize < small_frame_gather_bytes:
        out = jnp.take(x.reshape(num_frames, feat), jnp.asarray(src), axis=0)
        return out.reshape((n_out,) + feat_shape)

    dst_tbl, cnt_tbl, max_d = _build_fanout_tables(src, num_frames)

    vmem_budget = _vmem_budget_bytes()
    if max_block_bytes is None:
        # ~6 MiB chunks on v7x (48 MiB budget), ~12 MiB on v5e/v6e (96 MiB).
        max_block_bytes = int(min(max(vmem_budget // 8, 1 << 20), 16 << 20))

    # ---- Sublane/lane-dense tiling of the flattened feature axis -----------
    row_budget = max(SUBLANES, max_block_bytes // (LANES * itemsize))
    feat128 = _round_up(feat, LANES)
    r_full = feat128 // LANES
    if r_full <= row_budget:
        r_pad, blk_r = r_full, r_full            # whole frame in one row block
    else:
        cap_rows = max(SUBLANES, (row_budget // SUBLANES) * SUBLANES)
        r_pad = _round_up(r_full, SUBLANES)
        blk_r = SUBLANES
        for r in range(cap_rows, SUBLANES - 1, -SUBLANES):
            if r_pad % r == 0:
                blk_r = r
                break
        if blk_r < max(SUBLANES, cap_rows // 4):
            # No good divisor: pad the row axis instead of tiny chunks.
            blk_r = cap_rows
            r_pad = _round_up(r_full, blk_r)
    feat_pad = r_pad * LANES
    n_fblocks = r_pad // blk_r

    # ---- Batch small frames per grid step -----------------------------------
    if n_fblocks == 1:
        frames_budget = max(1, max_block_bytes // max(1, feat_pad * itemsize))
        target = min(num_frames, frames_budget, 8)
        if num_frames >= 2:
            target = min(target, (num_frames + 1) // 2)   # keep >=2 frame groups
        blk_t = 1
        for t in range(max(1, target), 0, -1):
            if num_frames % t == 0:
                blk_t = t
                break
    else:
        blk_t = 1
    n_fgroups = num_frames // blk_t

    # ---- Layout the input: (T, r_pad, 128), padding only when necessary -----
    x_flat = x.reshape(num_frames, feat)
    if feat_pad != feat:
        x_flat = jnp.pad(x_flat, ((0, 0), (0, feat_pad - feat)))
    x_tiled = x_flat.reshape(num_frames, r_pad, LANES)

    max_copies = blk_t * max_d

    def kernel(dst_ref, cnt_ref, x_ref, o_ref, sem):
        g = pl.program_id(0)                     # frame-group index
        f = pl.program_id(1)                     # row-chunk index
        r0 = pl.multiple_of(f * blk_r, SUBLANES)

        def copy(t, d):
            frame = g * blk_t + t
            out_row = dst_ref[frame * max_d + d]
            return pltpu.make_async_copy(
                x_ref.at[pl.ds(t, 1)],
                o_ref.at[pl.ds(out_row, 1), pl.ds(r0, blk_r), :],
                sem.at[t * max_d + d])

        # Fan the VMEM-resident frame chunks out to all destination output
        # rows: issue every write first (kept in flight together), then wait.
        # The BlockSpec pipeline is already prefetching the next input block,
        # so reads and writes of adjacent steps overlap.
        for t in range(blk_t):
            for d in range(max_d):
                @pl.when(d < cnt_ref[g * blk_t + t])
                def _(t=t, d=d):
                    copy(t, d).start()
        for t in range(blk_t):
            for d in range(max_d):
                @pl.when(d < cnt_ref[g * blk_t + t])
                def _(t=t, d=d):
                    copy(t, d).wait()

    grid_spec = pltpu.PrefetchScalarGridSpec(
        num_scalar_prefetch=2,                   # dst table + per-frame counts
        grid=(n_fgroups, n_fblocks),
        in_specs=[
            pl.BlockSpec((blk_t, blk_r, LANES),
                         lambda g, f, dst, cnt: (g, f, 0)),
        ],
        out_specs=pl.BlockSpec(memory_space=pl.ANY),   # raw HBM ref, manual DMA
        scratch_shapes=[pltpu.SemaphoreType.DMA((max_copies,))],
    )

    block_bytes = blk_t * blk_r * LANES * itemsize     # true (un-padded) bytes
    vmem_limit = int(min(max(3 * block_bytes + (2 << 20), 16 << 20), vmem_budget))
    bytes_accessed = (num_frames + n_out) * feat_pad * itemsize

    out_tiled = pl.pallas_call(
        kernel,
        out_shape=jax.ShapeDtypeStruct((n_out, r_pad, LANES), x.dtype),
        grid_spec=grid_spec,
        compiler_params=pltpu.CompilerParams(
            dimension_semantics=("parallel", "parallel"),
            vmem_limit_bytes=vmem_limit),
        cost_estimate=pl.CostEstimate(
            flops=0, transcendentals=0, bytes_accessed=int(bytes_accessed)),
    )(jnp.asarray(dst_tbl), jnp.asarray(cnt_tbl), x_tiled)

    out_flat = out_tiled.reshape(n_out, feat_pad)
    if feat_pad != feat:
        out_flat = out_flat[:, :feat]
    return out_flat.reshape((n_out,) + feat_shape)


if __name__ == "__main__":
    key = jax.random.PRNGKey(0)
    T, C, H, W = 4, 4, 16, 16            # C*H*W = 1024 -> fully lane-dense frames
    cached_items = [0, -1]               # standard openpifpaf tcaf configuration

    x = jax.random.normal(key, (T, C, H, W), dtype=jnp.float32)
    ref = x[jnp.asarray(_simulate_cache_indices(T, cached_items))]

    # Pallas fan-out kernel path (force it even though the demo frames are tiny).
    out = running_cache_forward(x, cached_items, small_frame_gather_bytes=0)
    out = jax.block_until_ready(out)
    assert out.shape == (T * len(cached_items), C, H, W)
    np.testing.assert_allclose(np.asarray(out), np.asarray(ref), rtol=0, atol=0)

    # Default size-dispatch path (tiny frames -> plain XLA gather) for sanity.
    out_gather = jax.block_until_ready(running_cache_forward(x, cached_items))
    np.testing.assert_allclose(np.asarray(out_gather), np.asarray(ref), rtol=0, atol=0)

    # TODO(synk): the mismatched-image-size repair branch in forward() cannot
    # trigger when the input is a single stacked (T, C, H, W) tensor, and the
    # cross-call persistence of the module's ring buffer (state between
    # forward() calls) is intentionally not modeled — each call starts empty.
    print("KERNEL_OK")
</pallas_src>

<mosaic_0001>
module attributes {stable_mosaic.version = 11 : i64} {
  func.func @kernel(%arg0: i32, %arg1: i32, %arg2: memref<12xi32, #tpu.memory_space<smem>>, %arg3: memref<4xi32, #tpu.memory_space<smem>>, %arg4: memref<2x8x128xf32, #tpu.memory_space<vmem>>, %arg5: memref<8x8x128xf32, #tpu.memory_space<any>>, %arg6: memref<6x!tpu.dma_semaphore, #tpu.memory_space<semaphore_mem>>) attributes {dimension_semantics = [#tpu.dimension_semantics<parallel>, #tpu.dimension_semantics<parallel>], iteration_bounds = array<i64: 2, 1>, scalar_prefetch = 2 : i64, scratch_operands = 1 : i64, tpu.core_type = #tpu.core_type<tc>, window_params = [{transform_indices = @transform_0, window_bounds = array<i64: 2, 8, 128>}, {}]} {
    %c8_i32 = arith.constant 8 : i32
    %0 = arith.muli %arg1, %c8_i32 : i32
    %1 = tpu.assume_multiple %0, 8 : i32
    %c2_i32 = arith.constant 2 : i32
    %2 = arith.muli %arg0, %c2_i32 : i32
    %c0_i32 = arith.constant 0 : i32
    %3 = arith.addi %2, %c0_i32 : i32
    %4 = arith.index_cast %3 : i32 to index
    %5 = memref.load %arg3[%4] : memref<4xi32, #tpu.memory_space<smem>>
    %c0_i32_0 = arith.constant 0 : i32
    %6 = arith.cmpi sgt, %5, %c0_i32_0 : i32
    %7 = arith.extui %6 : i1 to i32
    %c0_i32_1 = arith.constant 0 : i32
    %8 = arith.cmpi ne, %7, %c0_i32_1 : i32
    scf.if %8 {
      %c2_i32_45 = arith.constant 2 : i32
      %86 = arith.muli %arg0, %c2_i32_45 : i32
      %c0_i32_46 = arith.constant 0 : i32
      %87 = arith.addi %86, %c0_i32_46 : i32
      %c3_i32 = arith.constant 3 : i32
      %88 = arith.muli %87, %c3_i32 : i32
      %c0_i32_47 = arith.constant 0 : i32
      %89 = arith.addi %88, %c0_i32_47 : i32
      %90 = arith.index_cast %89 : i32 to index
      %91 = memref.load %arg2[%90] : memref<12xi32, #tpu.memory_space<smem>>
      %c0_i32_48 = arith.constant 0 : i32
      %c0_i32_49 = arith.constant 0 : i32
      %c0_i32_50 = arith.constant 0 : i32
      %c0_i32_51 = arith.constant 0 : i32
      %92 = tpu.memref_slice %arg4[%c0_i32_49, %c0_i32_50, %c0_i32_51] : memref<2x8x128xf32, #tpu.memory_space<vmem>> -> memref<1x8x128xf32, #tpu.memory_space<vmem>>
      %c0_i32_52 = arith.constant 0 : i32
      %93 = tpu.memref_slice %arg5[%91, %1, %c0_i32_52] : memref<8x8x128xf32, #tpu.memory_space<any>> -> memref<1x8x128xf32, #tpu.memory_space<any>>
      %94 = tpu.memref_slice %arg6[%c0_i32_48] : memref<6x!tpu.dma_semaphore, #tpu.memory_space<semaphore_mem>> -> memref<1x!tpu.dma_semaphore, #tpu.memory_space<semaphore_mem>>
      %95 = tpu.memref_squeeze %94 : memref<1x!tpu.dma_semaphore, #tpu.memory_space<semaphore_mem>> -> memref<!tpu.dma_semaphore, #tpu.memory_space<semaphore_mem>>
      tpu.enqueue_dma source(%92 : memref<1x8x128xf32, #tpu.memory_space<vmem>>) target(%93 : memref<1x8x128xf32, #tpu.memory_space<any>>) target_semaphore(%95 : memref<!tpu.dma_semaphore, #tpu.memory_space<semaphore_mem>>)
    } else {
    }
    %c2_i32_2 = arith.constant 2 : i32
    %9 = arith.muli %arg0, %c2_i32_2 : i32
    %c0_i32_3 = arith.constant 0 : i32
    %10 = arith.addi %9, %c0_i32_3 : i32
    %11 = arith.index_cast %10 : i32 to index
    %12 = memref.load %arg3[%11] : memref<4xi32, #tpu.memory_space<smem>>
    %c1_i32 = arith.constant 1 : i32
    %13 = arith.cmpi sgt, %12, %c1_i32 : i32
    %14 = arith.extui %13 : i1 to i32
    %c0_i32_4 = arith.constant 0 : i32
    %15 = arith.cmpi ne, %14, %c0_i32_4 : i32
    scf.if %15 {
      %c2_i32_45 = arith.constant 2 : i32
      %86 = arith.muli %arg0, %c2_i32_45 : i32
      %c0_i32_46 = arith.constant 0 : i32
      %87 = arith.addi %86, %c0_i32_46 : i32
      %c3_i32 = arith.constant 3 : i32
      %88 = arith.muli %87, %c3_i32 : i32
      %c1_i32_47 = arith.constant 1 : i32
      %89 = arith.addi %88, %c1_i32_47 : i32
      %90 = arith.index_cast %89 : i32 to index
      %91 = memref.load %arg2[%90] : memref<12xi32, #tpu.memory_space<smem>>
      %c1_i32_48 = arith.constant 1 : i32
      %c0_i32_49 = arith.constant 0 : i32
      %c0_i32_50 = arith.constant 0 : i32
      %c0_i32_51 = arith.constant 0 : i32
      %92 = tpu.memref_slice %arg4[%c0_i32_49, %c0_i32_50, %c0_i32_51] : memref<2x8x128xf32, #tpu.memory_space<vmem>> -> memref<1x8x128xf32, #tpu.memory_space<vmem>>
      %c0_i32_52 = arith.constant 0 : i32
      %93 = tpu.memref_slice %arg5[%91, %1, %c0_i32_52] : memref<8x8x128xf32, #tpu.memory_space<any>> -> memref<1x8x128xf32, #tpu.memory_space<any>>
      %94 = tpu.memref_slice %arg6[%c1_i32_48] : memref<6x!tpu.dma_semaphore, #tpu.memory_space<semaphore_mem>> -> memref<1x!tpu.dma_semaphore, #tpu.memory_space<semaphore_mem>>
      %95 = tpu.memref_squeeze %94 : memref<1x!tpu.dma_semaphore, #tpu.memory_space<semaphore_mem>> -> memref<!tpu.dma_semaphore, #tpu.memory_space<semaphore_mem>>
      tpu.enqueue_dma source(%92 : memref<1x8x128xf32, #tpu.memory_space<vmem>>) target(%93 : memref<1x8x128xf32, #tpu.memory_space<any>>) target_semaphore(%95 : memref<!tpu.dma_semaphore, #tpu.memory_space<semaphore_mem>>)
    } else {
    }
    %c2_i32_5 = arith.constant 2 : i32
    %16 = arith.muli %arg0, %c2_i32_5 : i32
    %c0_i32_6 = arith.constant 0 : i32
    %17 = arith.addi %16, %c0_i32_6 : i32
    %18 = arith.index_cast %17 : i32 to index
    %19 = memref.load %arg3[%18] : memref<4xi32, #tpu.memory_space<smem>>
    %c2_i32_7 = arith.constant 2 : i32
    %20 = arith.cmpi sgt, %19, %c2_i32_7 : i32
    %21 = arith.extui %20 : i1 to i32
    %c0_i32_8 = arith.constant 0 : i32
    %22 = arith.cmpi ne, %21, %c0_i32_8 : i32
    scf.if %22 {
      %c2_i32_45 = arith.constant 2 : i32
      %86 = arith.muli %arg0, %c2_i32_45 : i32
      %c0_i32_46 = arith.constant 0 : i32
      %87 = arith.addi %86, %c0_i32_46 : i32
      %c3_i32 = arith.constant 3 : i32
      %88 = arith.muli %87, %c3_i32 : i32
      %c2_i32_47 = arith.constant 2 : i32
      %89 = arith.addi %88, %c2_i32_47 : i32
      %90 = arith.index_cast %89 : i32 to index
      %91 = memref.load %arg2[%90] : memref<12xi32, #tpu.memory_space<smem>>
      %c2_i32_48 = arith.constant 2 : i32
      %c0_i32_49 = arith.constant 0 : i32
      %c0_i32_50 = arith.constant 0 : i32
      %c0_i32_51 = arith.constant 0 : i32
      %92 = tpu.memref_slice %arg4[%c0_i32_49, %c0_i32_50, %c0_i32_51] : memref<2x8x128xf32, #tpu.memory_space<vmem>> -> memref<1x8x128xf32, #tpu.memory_space<vmem>>
      %c0_i32_52 = arith.constant 0 : i32
      %93 = tpu.memref_slice %arg5[%91, %1, %c0_i32_52] : memref<8x8x128xf32, #tpu.memory_space<any>> -> memref<1x8x128xf32, #tpu.memory_space<any>>
      %94 = tpu.memref_slice %arg6[%c2_i32_48] : memref<6x!tpu.dma_semaphore, #tpu.memory_space<semaphore_mem>> -> memref<1x!tpu.dma_semaphore, #tpu.memory_space<semaphore_mem>>
      %95 = tpu.memref_squeeze %94 : memref<1x!tpu.dma_semaphore, #tpu.memory_space<semaphore_mem>> -> memref<!tpu.dma_semaphore, #tpu.memory_space<semaphore_mem>>
      tpu.enqueue_dma source(%92 : memref<1x8x128xf32, #tpu.memory_space<vmem>>) target(%93 : memref<1x8x128xf32, #tpu.memory_space<any>>) target_semaphore(%95 : memref<!tpu.dma_semaphore, #tpu.memory_space<semaphore_mem>>)
    } else {
    }
    %c2_i32_9 = arith.constant 2 : i32
    %23 = arith.muli %arg0, %c2_i32_9 : i32
    %c1_i32_10 = arith.constant 1 : i32
    %24 = arith.addi %23, %c1_i32_10 : i32
    %25 = arith.index_cast %24 : i32 to index
    %26 = memref.load %arg3[%25] : memref<4xi32, #tpu.memory_space<smem>>
    %c0_i32_11 = arith.constant 0 : i32
    %27 = arith.cmpi sgt, %26, %c0_i32_11 : i32
    %28 = arith.extui %27 : i1 to i32
    %c0_i32_12 = arith.constant 0 : i32
    %29 = arith.cmpi ne, %28, %c0_i32_12 : i32
    scf.if %29 {
      %c2_i32_45 = arith.constant 2 : i32
      %86 = arith.muli %arg0, %c2_i32_45 : i32
      %c1_i32_46 = arith.constant 1 : i32
      %87 = arith.addi %86, %c1_i32_46 : i32
      %c3_i32 = arith.constant 3 : i32
      %88 = arith.muli %87, %c3_i32 : i32
      %c0_i32_47 = arith.constant 0 : i32
      %89 = arith.addi %88, %c0_i32_47 : i32
      %90 = arith.index_cast %89 : i32 to index
      %91 = memref.load %arg2[%90] : memref<12xi32, #tpu.memory_space<smem>>
      %c3_i32_48 = arith.constant 3 : i32
      %c1_i32_49 = arith.constant 1 : i32
      %c0_i32_50 = arith.constant 0 : i32
      %c0_i32_51 = arith.constant 0 : i32
      %92 = tpu.memref_slice %arg4[%c1_i32_49, %c0_i32_50, %c0_i32_51] : memref<2x8x128xf32, #tpu.memory_space<vmem>> -> memref<1x8x128xf32, #tpu.memory_space<vmem>>
      %c0_i32_52 = arith.constant 0 : i32
      %93 = tpu.memref_slice %arg5[%91, %1, %c0_i32_52] : memref<8x8x128xf32, #tpu.memory_space<any>> -> memref<1x8x128xf32, #tpu.memory_space<any>>
      %94 = tpu.memref_slice %arg6[%c3_i32_48] : memref<6x!tpu.dma_semaphore, #tpu.memory_space<semaphore_mem>> -> memref<1x!tpu.dma_semaphore, #tpu.memory_space<semaphore_mem>>
      %95 = tpu.memref_squeeze %94 : memref<1x!tpu.dma_semaphore, #tpu.memory_space<semaphore_mem>> -> memref<!tpu.dma_semaphore, #tpu.memory_space<semaphore_mem>>
      tpu.enqueue_dma source(%92 : memref<1x8x128xf32, #tpu.memory_space<vmem>>) target(%93 : memref<1x8x128xf32, #tpu.memory_space<any>>) target_semaphore(%95 : memref<!tpu.dma_semaphore, #tpu.memory_space<semaphore_mem>>)
    } else {
    }
    %c2_i32_13 = arith.constant 2 : i32
    %30 = arith.muli %arg0, %c2_i32_13 : i32
    %c1_i32_14 = arith.constant 1 : i32
    %31 = arith.addi %30, %c1_i32_14 : i32
    %32 = arith.index_cast %31 : i32 to index
    %33 = memref.load %arg3[%32] : memref<4xi32, #tpu.memory_space<smem>>
    %c1_i32_15 = arith.constant 1 : i32
    %34 = arith.cmpi sgt, %33, %c1_i32_15 : i32
    %35 = arith.extui %34 : i1 to i32
    %c0_i32_16 = arith.constant 0 : i32
    %36 = arith.cmpi ne, %35, %c0_i32_16 : i32
    scf.if %36 {
      %c2_i32_45 = arith.constant 2 : i32
      %86 = arith.muli %arg0, %c2_i32_45 : i32
      %c1_i32_46 = arith.constant 1 : i32
      %87 = arith.addi %86, %c1_i32_46 : i32
      %c3_i32 = arith.constant 3 : i32
      %88 = arith.muli %87, %c3_i32 : i32
      %c1_i32_47 = arith.constant 1 : i32
      %89 = arith.addi %88, %c1_i32_47 : i32
      %90 = arith.index_cast %89 : i32 to index
      %91 = memref.load %arg2[%90] : memref<12xi32, #tpu.memory_space<smem>>
      %c4_i32 = arith.constant 4 : i32
      %c1_i32_48 = arith.constant 1 : i32
      %c0_i32_49 = arith.constant 0 : i32
      %c0_i32_50 = arith.constant 0 : i32
      %92 = tpu.memref_slice %arg4[%c1_i32_48, %c0_i32_49, %c0_i32_50] : memref<2x8x128xf32, #tpu.memory_space<vmem>> -> memref<1x8x128xf32, #tpu.memory_space<vmem>>
      %c0_i32_51 = arith.constant 0 : i32
      %93 = tpu.memref_slice %arg5[%91, %1, %c0_i32_51] : memref<8x8x128xf32, #tpu.memory_space<any>> -> memref<1x8x128xf32, #tpu.memory_space<any>>
      %94 = tpu.memref_slice %arg6[%c4_i32] : memref<6x!tpu.dma_semaphore, #tpu.memory_space<semaphore_mem>> -> memref<1x!tpu.dma_semaphore, #tpu.memory_space<semaphore_mem>>
      %95 = tpu.memref_squeeze %94 : memref<1x!tpu.dma_semaphore, #tpu.memory_space<semaphore_mem>> -> memref<!tpu.dma_semaphore, #tpu.memory_space<semaphore_mem>>
      tpu.enqueue_dma source(%92 : memref<1x8x128xf32, #tpu.memory_space<vmem>>) target(%93 : memref<1x8x128xf32, #tpu.memory_space<any>>) target_semaphore(%95 : memref<!tpu.dma_semaphore, #tpu.memory_space<semaphore_mem>>)
    } else {
    }
    %c2_i32_17 = arith.constant 2 : i32
    %37 = arith.muli %arg0, %c2_i32_17 : i32
    %c1_i32_18 = arith.constant 1 : i32
    %38 = arith.addi %37, %c1_i32_18 : i32
    %39 = arith.index_cast %38 : i32 to index
    %40 = memref.load %arg3[%39] : memref<4xi32, #tpu.memory_space<smem>>
    %c2_i32_19 = arith.constant 2 : i32
    %41 = arith.cmpi sgt, %40, %c2_i32_19 : i32
    %42 = arith.extui %41 : i1 to i32
    %c0_i32_20 = arith.constant 0 : i32
    %43 = arith.cmpi ne, %42, %c0_i32_20 : i32
    scf.if %43 {
      %c2_i32_45 = arith.constant 2 : i32
      %86 = arith.muli %arg0, %c2_i32_45 : i32
      %c1_i32_46 = arith.constant 1 : i32
      %87 = arith.addi %86, %c1_i32_46 : i32
      %c3_i32 = arith.constant 3 : i32
      %88 = arith.muli %87, %c3_i32 : i32
      %c2_i32_47 = arith.constant 2 : i32
      %89 = arith.addi %88, %c2_i32_47 : i32
      %90 = arith.index_cast %89 : i32 to index
      %91 = memref.load %arg2[%90] : memref<12xi32, #tpu.memory_space<smem>>
      %c5_i32 = arith.constant 5 : i32
      %c1_i32_48 = arith.constant 1 : i32
      %c0_i32_49 = arith.constant 0 : i32
      %c0_i32_50 = arith.constant 0 : i32
      %92 = tpu.memref_slice %arg4[%c1_i32_48, %c0_i32_49, %c0_i32_50] : memref<2x8x128xf32, #tpu.memory_space<vmem>> -> memref<1x8x128xf32, #tpu.memory_space<vmem>>
      %c0_i32_51 = arith.constant 0 : i32
      %93 = tpu.memref_slice %arg5[%91, %1, %c0_i32_51] : memref<8x8x128xf32, #tpu.memory_space<any>> -> memref<1x8x128xf32, #tpu.memory_space<any>>
      %94 = tpu.memref_slice %arg6[%c5_i32] : memref<6x!tpu.dma_semaphore, #tpu.memory_space<semaphore_mem>> -> memref<1x!tpu.dma_semaphore, #tpu.memory_space<semaphore_mem>>
      %95 = tpu.memref_squeeze %94 : memref<1x!tpu.dma_semaphore, #tpu.memory_space<semaphore_mem>> -> memref<!tpu.dma_semaphore, #tpu.memory_space<semaphore_mem>>
      tpu.enqueue_dma source(%92 : memref<1x8x128xf32, #tpu.memory_space<vmem>>) target(%93 : memref<1x8x128xf32, #tpu.memory_space<any>>) target_semaphore(%95 : memref<!tpu.dma_semaphore, #tpu.memory_space<semaphore_mem>>)
    } else {
    }
    %c2_i32_21 = arith.constant 2 : i32
    %44 = arith.muli %arg0, %c2_i32_21 : i32
    %c0_i32_22 = arith.constant 0 : i32
    %45 = arith.addi %44, %c0_i32_22 : i32
    %46 = arith.index_cast %45 : i32 to index
    %47 = memref.load %arg3[%46] : memref<4xi32, #tpu.memory_space<smem>>
    %c0_i32_23 = arith.constant 0 : i32
    %48 = arith.cmpi sgt, %47, %c0_i32_23 : i32
    %49 = arith.extui %48 : i1 to i32
    %c0_i32_24 = arith.constant 0 : i32
    %50 = arith.cmpi ne, %49, %c0_i32_24 : i32
    scf.if %50 {
      %c2_i32_45 = arith.constant 2 : i32
      %86 = arith.muli %arg0, %c2_i32_45 : i32
      %c0_i32_46 = arith.constant 0 : i32
      %87 = arith.addi %86, %c0_i32_46 : i32
      %c3_i32 = arith.constant 3 : i32
      %88 = arith.muli %87, %c3_i32 : i32
      %c0_i32_47 = arith.constant 0 : i32
      %89 = arith.addi %88, %c0_i32_47 : i32
      %90 = arith.index_cast %89 : i32 to index
      %91 = memref.load %arg2[%90] : memref<12xi32, #tpu.memory_space<smem>>
      %c0_i32_48 = arith.constant 0 : i32
      %c0_i32_49 = arith.constant 0 : i32
      %c0_i32_50 = arith.constant 0 : i32
      %c0_i32_51 = arith.constant 0 : i32
      %92 = tpu.memref_slice %arg4[%c0_i32_49, %c0_i32_50, %c0_i32_51] : memref<2x8x128xf32, #tpu.memory_space<vmem>> -> memref<1x8x128xf32, #tpu.memory_space<vmem>>
      %c0_i32_52 = arith.constant 0 : i32
      %93 = tpu.memref_slice %arg5[%91, %1, %c0_i32_52] : memref<8x8x128xf32, #tpu.memory_space<any>> -> memref<1x8x128xf32, #tpu.memory_space<any>>
      %94 = tpu.memref_slice %arg6[%c0_i32_48] : memref<6x!tpu.dma_semaphore, #tpu.memory_space<semaphore_mem>> -> memref<1x!tpu.dma_semaphore, #tpu.memory_space<semaphore_mem>>
      %95 = tpu.memref_squeeze %94 : memref<1x!tpu.dma_semaphore, #tpu.memory_space<semaphore_mem>> -> memref<!tpu.dma_semaphore, #tpu.memory_space<semaphore_mem>>
      tpu.wait_dma2 semaphore(%95 : memref<!tpu.dma_semaphore, #tpu.memory_space<semaphore_mem>>) src(%92 : memref<1x8x128xf32, #tpu.memory_space<vmem>>) dst(%93 : memref<1x8x128xf32, #tpu.memory_space<any>>)
    } else {
    }
    %c2_i32_25 = arith.constant 2 : i32
    %51 = arith.muli %arg0, %c2_i32_25 : i32
    %c0_i32_26 = arith.constant 0 : i32
    %52 = arith.addi %51, %c0_i32_26 : i32
    %53 = arith.index_cast %52 : i32 to index
    %54 = memref.load %arg3[%53] : memref<4xi32, #tpu.memory_space<smem>>
    %c1_i32_27 = arith.constant 1 : i32
    %55 = arith.cmpi sgt, %54, %c1_i32_27 : i32
    %56 = arith.extui %55 : i1 to i32
    %c0_i32_28 = arith.constant 0 : i32
    %57 = arith.cmpi ne, %56, %c0_i32_28 : i32
    scf.if %57 {
      %c2_i32_45 = arith.constant 2 : i32
      %86 = arith.muli %arg0, %c2_i32_45 : i32
      %c0_i32_46 = arith.constant 0 : i32
      %87 = arith.addi %86, %c0_i32_46 : i32
      %c3_i32 = arith.constant 3 : i32
      %88 = arith.muli %87, %c3_i32 : i32
      %c1_i32_47 = arith.constant 1 : i32
      %89 = arith.addi %88, %c1_i32_47 : i32
      %90 = arith.index_cast %89 : i32 to index
      %91 = memref.load %arg2[%90] : memref<12xi32, #tpu.memory_space<smem>>
      %c1_i32_48 = arith.constant 1 : i32
      %c0_i32_49 = arith.constant 0 : i32
      %c0_i32_50 = arith.constant 0 : i32
      %c0_i32_51 = arith.constant 0 : i32
      %92 = tpu.memref_slice %arg4[%c0_i32_49, %c0_i32_50, %c0_i32_51] : memref<2x8x128xf32, #tpu.memory_space<vmem>> -> memref<1x8x128xf32, #tpu.memory_space<vmem>>
      %c0_i32_52 = arith.constant 0 : i32
      %93 = tpu.memref_slice %arg5[%91, %1, %c0_i32_52] : memref<8x8x128xf32, #tpu.memory_space<any>> -> memref<1x8x128xf32, #tpu.memory_space<any>>
      %94 = tpu.memref_slice %arg6[%c1_i32_48] : memref<6x!tpu.dma_semaphore, #tpu.memory_space<semaphore_mem>> -> memref<1x!tpu.dma_semaphore, #tpu.memory_space<semaphore_mem>>
      %95 = tpu.memref_squeeze %94 : memref<1x!tpu.dma_semaphore, #tpu.memory_space<semaphore_mem>> -> memref<!tpu.dma_semaphore, #tpu.memory_space<semaphore_mem>>
      tpu.wait_dma2 semaphore(%95 : memref<!tpu.dma_semaphore, #tpu.memory_space<semaphore_mem>>) src(%92 : memref<1x8x128xf32, #tpu.memory_space<vmem>>) dst(%93 : memref<1x8x128xf32, #tpu.memory_space<any>>)
    } else {
    }
    %c2_i32_29 = arith.constant 2 : i32
    %58 = arith.muli %arg0, %c2_i32_29 : i32
    %c0_i32_30 = arith.constant 0 : i32
    %59 = arith.addi %58, %c0_i32_30 : i32
    %60 = arith.index_cast %59 : i32 to index
    %61 = memref.load %arg3[%60] : memref<4xi32, #tpu.memory_space<smem>>
    %c2_i32_31 = arith.constant 2 : i32
    %62 = arith.cmpi sgt, %61, %c2_i32_31 : i32
    %63 = arith.extui %62 : i1 to i32
    %c0_i32_32 = arith.constant 0 : i32
    %64 = arith.cmpi ne, %63, %c0_i32_32 : i32
    scf.if %64 {
      %c2_i32_45 = arith.constant 2 : i32
      %86 = arith.muli %arg0, %c2_i32_45 : i32
      %c0_i32_46 = arith.constant 0 : i32
      %87 = arith.addi %86, %c0_i32_46 : i32
      %c3_i32 = arith.constant 3 : i32
      %88 = arith.muli %87, %c3_i32 : i32
      %c2_i32_47 = arith.constant 2 : i32
      %89 = arith.addi %88, %c2_i32_47 : i32
      %90 = arith.index_cast %89 : i32 to index
      %91 = memref.load %arg2[%90] : memref<12xi32, #tpu.memory_space<smem>>
      %c2_i32_48 = arith.constant 2 : i32
      %c0_i32_49 = arith.constant 0 : i32
      %c0_i32_50 = arith.constant 0 : i32
      %c0_i32_51 = arith.constant 0 : i32
      %92 = tpu.memref_slice %arg4[%c0_i32_49, %c0_i32_50, %c0_i32_51] : memref<2x8x128xf32, #tpu.memory_space<vmem>> -> memref<1x8x128xf32, #tpu.memory_space<vmem>>
      %c0_i32_52 = arith.constant 0 : i32
      %93 = tpu.memref_slice %arg5[%91, %1, %c0_i32_52] : memref<8x8x128xf32, #tpu.memory_space<any>> -> memref<1x8x128xf32, #tpu.memory_space<any>>
      %94 = tpu.memref_slice %arg6[%c2_i32_48] : memref<6x!tpu.dma_semaphore, #tpu.memory_space<semaphore_mem>> -> memref<1x!tpu.dma_semaphore, #tpu.memory_space<semaphore_mem>>
      %95 = tpu.memref_squeeze %94 : memref<1x!tpu.dma_semaphore, #tpu.memory_space<semaphore_mem>> -> memref<!tpu.dma_semaphore, #tpu.memory_space<semaphore_mem>>
      tpu.wait_dma2 semaphore(%95 : memref<!tpu.dma_semaphore, #tpu.memory_space<semaphore_mem>>) src(%92 : memref<1x8x128xf32, #tpu.memory_space<vmem>>) dst(%93 : memref<1x8x128xf32, #tpu.memory_space<any>>)
    } else {
    }
    %c2_i32_33 = arith.constant 2 : i32
    %65 = arith.muli %arg0, %c2_i32_33 : i32
    %c1_i32_34 = arith.constant 1 : i32
    %66 = arith.addi %65, %c1_i32_34 : i32
    %67 = arith.index_cast %66 : i32 to index
    %68 = memref.load %arg3[%67] : memref<4xi32, #tpu.memory_space<smem>>
    %c0_i32_35 = arith.constant 0 : i32
    %69 = arith.cmpi sgt, %68, %c0_i32_35 : i32
    %70 = arith.extui %69 : i1 to i32
    %c0_i32_36 = arith.constant 0 : i32
    %71 = arith.cmpi ne, %70, %c0_i32_36 : i32
    scf.if %71 {
      %c2_i32_45 = arith.constant 2 : i32
      %86 = arith.muli %arg0, %c2_i32_45 : i32
      %c1_i32_46 = arith.constant 1 : i32
      %87 = arith.addi %86, %c1_i32_46 : i32
      %c3_i32 = arith.constant 3 : i32
      %88 = arith.muli %87, %c3_i32 : i32
      %c0_i32_47 = arith.constant 0 : i32
      %89 = arith.addi %88, %c0_i32_47 : i32
      %90 = arith.index_cast %89 : i32 to index
      %91 = memref.load %arg2[%90] : memref<12xi32, #tpu.memory_space<smem>>
      %c3_i32_48 = arith.constant 3 : i32
      %c1_i32_49 = arith.constant 1 : i32
      %c0_i32_50 = arith.constant 0 : i32
      %c0_i32_51 = arith.constant 0 : i32
      %92 = tpu.memref_slice %arg4[%c1_i32_49, %c0_i32_50, %c0_i32_51] : memref<2x8x128xf32, #tpu.memory_space<vmem>> -> memref<1x8x128xf32, #tpu.memory_space<vmem>>
      %c0_i32_52 = arith.constant 0 : i32
      %93 = tpu.memref_slice %arg5[%91, %1, %c0_i32_52] : memref<8x8x128xf32, #tpu.memory_space<any>> -> memref<1x8x128xf32, #tpu.memory_space<any>>
      %94 = tpu.memref_slice %arg6[%c3_i32_48] : memref<6x!tpu.dma_semaphore, #tpu.memory_space<semaphore_mem>> -> memref<1x!tpu.dma_semaphore, #tpu.memory_space<semaphore_mem>>
      %95 = tpu.memref_squeeze %94 : memref<1x!tpu.dma_semaphore, #tpu.memory_space<semaphore_mem>> -> memref<!tpu.dma_semaphore, #tpu.memory_space<semaphore_mem>>
      tpu.wait_dma2 semaphore(%95 : memref<!tpu.dma_semaphore, #tpu.memory_space<semaphore_mem>>) src(%92 : memref<1x8x128xf32, #tpu.memory_space<vmem>>) dst(%93 : memref<1x8x128xf32, #tpu.memory_space<any>>)
    } else {
    }
    %c2_i32_37 = arith.constant 2 : i32
    %72 = arith.muli %arg0, %c2_i32_37 : i32
    %c1_i32_38 = arith.constant 1 : i32
    %73 = arith.addi %72, %c1_i32_38 : i32
    %74 = arith.index_cast %73 : i32 to index
    %75 = memref.load %arg3[%74] : memref<4xi32, #tpu.memory_space<smem>>
    %c1_i32_39 = arith.constant 1 : i32
    %76 = arith.cmpi sgt, %75, %c1_i32_39 : i32
    %77 = arith.extui %76 : i1 to i32
    %c0_i32_40 = arith.constant 0 : i32
    %78 = arith.cmpi ne, %77, %c0_i32_40 : i32
    scf.if %78 {
      %c2_i32_45 = arith.constant 2 : i32
      %86 = arith.muli %arg0, %c2_i32_45 : i32
      %c1_i32_46 = arith.constant 1 : i32
      %87 = arith.addi %86, %c1_i32_46 : i32
      %c3_i32 = arith.constant 3 : i32
      %88 = arith.muli %87, %c3_i32 : i32
      %c1_i32_47 = arith.constant 1 : i32
      %89 = arith.addi %88, %c1_i32_47 : i32
      %90 = arith.index_cast %89 : i32 to index
      %91 = memref.load %arg2[%90] : memref<12xi32, #tpu.memory_space<smem>>
      %c4_i32 = arith.constant 4 : i32
      %c1_i32_48 = arith.constant 1 : i32
      %c0_i32_49 = arith.constant 0 : i32
      %c0_i32_50 = arith.constant 0 : i32
      %92 = tpu.memref_slice %arg4[%c1_i32_48, %c0_i32_49, %c0_i32_50] : memref<2x8x128xf32, #tpu.memory_space<vmem>> -> memref<1x8x128xf32, #tpu.memory_space<vmem>>
      %c0_i32_51 = arith.constant 0 : i32
      %93 = tpu.memref_slice %arg5[%91, %1, %c0_i32_51] : memref<8x8x128xf32, #tpu.memory_space<any>> -> memref<1x8x128xf32, #tpu.memory_space<any>>
      %94 = tpu.memref_slice %arg6[%c4_i32] : memref<6x!tpu.dma_semaphore, #tpu.memory_space<semaphore_mem>> -> memref<1x!tpu.dma_semaphore, #tpu.memory_space<semaphore_mem>>
      %95 = tpu.memref_squeeze %94 : memref<1x!tpu.dma_semaphore, #tpu.memory_space<semaphore_mem>> -> memref<!tpu.dma_semaphore, #tpu.memory_space<semaphore_mem>>
      tpu.wait_dma2 semaphore(%95 : memref<!tpu.dma_semaphore, #tpu.memory_space<semaphore_mem>>) src(%92 : memref<1x8x128xf32, #tpu.memory_space<vmem>>) dst(%93 : memref<1x8x128xf32, #tpu.memory_space<any>>)
    } else {
    }
    %c2_i32_41 = arith.constant 2 : i32
    %79 = arith.muli %arg0, %c2_i32_41 : i32
    %c1_i32_42 = arith.constant 1 : i32
    %80 = arith.addi %79, %c1_i32_42 : i32
    %81 = arith.index_cast %80 : i32 to index
    %82 = memref.load %arg3[%81] : memref<4xi32, #tpu.memory_space<smem>>
    %c2_i32_43 = arith.constant 2 : i32
    %83 = arith.cmpi sgt, %82, %c2_i32_43 : i32
    %84 = arith.extui %83 : i1 to i32
    %c0_i32_44 = arith.constant 0 : i32
    %85 = arith.cmpi ne, %84, %c0_i32_44 : i32
    scf.if %85 {
      %c2_i32_45 = arith.constant 2 : i32
      %86 = arith.muli %arg0, %c2_i32_45 : i32
      %c1_i32_46 = arith.constant 1 : i32
      %87 = arith.addi %86, %c1_i32_46 : i32
      %c3_i32 = arith.constant 3 : i32
      %88 = arith.muli %87, %c3_i32 : i32
      %c2_i32_47 = arith.constant 2 : i32
      %89 = arith.addi %88, %c2_i32_47 : i32
      %90 = arith.index_cast %89 : i32 to index
      %91 = memref.load %arg2[%90] : memref<12xi32, #tpu.memory_space<smem>>
      %c5_i32 = arith.constant 5 : i32
      %c1_i32_48 = arith.constant 1 : i32
      %c0_i32_49 = arith.constant 0 : i32
      %c0_i32_50 = arith.constant 0 : i32
      %92 = tpu.memref_slice %arg4[%c1_i32_48, %c0_i32_49, %c0_i32_50] : memref<2x8x128xf32, #tpu.memory_space<vmem>> -> memref<1x8x128xf32, #tpu.memory_space<vmem>>
      %c0_i32_51 = arith.constant 0 : i32
      %93 = tpu.memref_slice %arg5[%91, %1, %c0_i32_51] : memref<8x8x128xf32, #tpu.memory_space<any>> -> memref<1x8x128xf32, #tpu.memory_space<any>>
      %94 = tpu.memref_slice %arg6[%c5_i32] : memref<6x!tpu.dma_semaphore, #tpu.memory_space<semaphore_mem>> -> memref<1x!tpu.dma_semaphore, #tpu.memory_space<semaphore_mem>>
      %95 = tpu.memref_squeeze %94 : memref<1x!tpu.dma_semaphore, #tpu.memory_space<semaphore_mem>> -> memref<!tpu.dma_semaphore, #tpu.memory_space<semaphore_mem>>
      tpu.wait_dma2 semaphore(%95 : memref<!tpu.dma_semaphore, #tpu.memory_space<semaphore_mem>>) src(%92 : memref<1x8x128xf32, #tpu.memory_space<vmem>>) dst(%93 : memref<1x8x128xf32, #tpu.memory_space<any>>)
    } else {
    }
    return
  }
  func.func @transform_0(%arg0: i32, %arg1: i32, %arg2: memref<12xi32, #tpu.memory_space<smem>>, %arg3: memref<4xi32, #tpu.memory_space<smem>>) -> (i32, i32, i32) {
    %c0_i32 = arith.constant 0 : i32
    %c0_i32_0 = arith.constant 0 : i32
    return %arg0, %arg1, %c0_i32 : i32, i32, i32
  }
}

</mosaic_0001>

<bundles_post_ra>
// kernel: tpu_custom_call.1
= control target key start
LH: loop header
LB: loop body
LE: loop exit
PB: predicated region body
PF: predicated region fallthrough
CT: control target
= control target key end

     0   :  { %s1464_s0 = inlined_call_operand.hbm [shape: s32[12], index: 0, kind: input, shape index: {}]   ;;  %s1465_s2 = inlined_call_operand.hbm [shape: f32[4,8,128], index: 2, kind: input, shape index: {}]   ;;  %s1466_s3 = inlined_call_operand.hbm [shape: f32[8,8,128], index: 3, kind: output, shape index: {}]   ;;  %s1467_s1 = inlined_call_operand.vmem [shape: s32[4], index: 1, kind: input, shape index: {}]  }
   0x1   :  { %1483 = sst [smem:[#allocation57_spill]] %s1465_s2  ;;  %s675_s14 = scalar_lea.hbm %s1464_s0, 16 }
   0x2   :  { %p676_p0 = scmp.ne.s32.totalorder %s1464_s0, %s675_s14  ;;  %p679_p1 = scmp.lt.u32.totalorder %s675_s14, %s1464_s0 }
   0x4   :  { %p681_p2 = pnand %p679_p1, %p676_p0 }
   0x6   :  { %684 = shalt.err (!%p681_p2)  }
   0x7   :  { %s985_s19 = smov [#allocation4]   ;;  %s10_s24 = sshll.u32 %s1467_s1, 4  ;;  %s11_s24 = int_to_ptr.vmem [resolvable:$true] %s10_s24 }
   0x8   :  { %9 = dma.hbm_to_smem %s1464_s0, 16, %s985_s19, [#allocation3] }
   0x9   :  { %s685_s25 = scalar_lea.vmem %s11_s24, 16  ;;  %p690_p4 = scmp.lt.s32.totalorder %s11_s24, %s11_s24 }
   0xa   :  { %p686_p3 = scmp.ne.s32.totalorder %s11_s24, %s685_s25  ;;  %p691_p5 = scmp.lt.s32.totalorder %s685_s25, %s685_s25 }
   0xc   :  { %p692_p6 = por %p691_p5, %p690_p4 }
   0xe   :  { %p693_p7 = pnand %p692_p6, %p686_p3 }
  0x10   :  { %696 = shalt.err (!%p693_p7)  }
  0x11   :  { %s986_s26 = smov [#allocation5]  }
  0x12   :  { %13 = dma.vmem_to_smem %s11_s24, 16, %s986_s26, [#allocation3] }
  0x13   :  { %931 = dma.done.wait [#allocation3], 32 }
  0x14   :  { %932 = vsyncadd [#allocation3], 4294967264 }
  0x15   :  { %15 = sfence }
  0x16   :  { %16 = vsyncpa [#allocation7], 0 }
  0x17   :  { %18 = vsyncpa [#allocation7 + $0x1], 0  ;;  %s1025_s0 = smov 0   ;;  %s1027_s27 = smov 0  }
  0x18   :  { %s1029_s1 = smov 0   ;;  %s1031_s28 = smov 0  }
  0x19   :  { %s1033_s29 = smov 0   ;;  %s1035_s30 = smov 0  }
  0x1a LB: > { %1484 = sst [smem:[#allocation54_spill]] %s979_s29  ;;  %s443_s4 = sadd.s32 4294967295, %s983_s30   ;;  %s983_s30 = sphi %s1035_s30, %s24_s30   ;;  %s979_s29 = sphi %s1033_s29, %s1549_s29   ;;  %s975_s28 = sphi %s1031_s28, %s1548_s28   ;;  %s971_s1 = sphi %s1029_s1, %s1552_s1   ;;  %s967_s27 = sphi %s1027_s27, %s1551_s27   ;;  %s963_s0 = sphi %s1025_s0, %s1550_s0  }
  0x1b   : > { %s33_s5 = sadd.s32 1, %s979_s29  ;;  %s42_s6 = sadd.s32 1, %s971_s1 }
  0x1c   : > { %p35_p8 = scmp.ge.s32.totalorder %s33_s5, 2  ;;  %p48_p9 = scmp.ne.s32.totalorder %s971_s1, %s967_s27 }
  0x1d   : > { %p49_p10 = scmp.eq.s32.totalorder %s983_s30, 0  ;;  %p55_p12 = scmp.ne.s32.totalorder %s967_s27, %s963_s0 }
  0x1e   : > { %s1554_s5 = smov (%p35_p8, %s33_s5), 0  ;;  %p56_p13 = scmp.eq.s32.totalorder %s443_s4, 0 }
  0x1f   : > { %1485 = sst [smem:[#allocation55_spill]] %s1554_s5  ;;  %p1061_p11 = por %p49_p10, %p48_p9 }
  0x20   : > { %s37_s8 = ssub.s32 %s979_s29, %s1554_s5  ;;  %p1068_p1 = por %p56_p13, %p55_p12 }
  0x21   : > { %p40_p0 = scmp.eq.s32.totalorder %s37_s8, 0  ;;  %p609_p2 = scmp.lt.s32.totalorder %s983_s30, 2 }
  0x22   : > { %s70_s11 = sand.u32 1, %s971_s1   ;;  %s484_s12 = sshll.u32 %s979_s29, 8 }
  0x23   : > { %s1074_s10 = scalar_select %p40_p0, %s971_s1, %s42_s6  }
  0x24   : > { %s447_s13 = sshll.u32 %s70_s11, 4  ;;  %s1489_s2 = sld [smem:[#allocation57_spill]] }
  0x25   : > { %1488 = sst [smem:[#allocation56_spill]] %s1074_s10  ;;  %s74_s17 = scalar_lea.vmem [#allocation6], %s447_s13 }
  0x26   : > { %s82_s18 = sshll.u32 %s74_s17, 4  ;;  %p1085_p3 = pnand %p609_p2, %p1061_p11  ;;  %s1089_s18 = int_to_ptr.vmem [resolvable:$true] %s82_s18 }
  0x27   : > { %s1091_s20 = scalar_lea.sflag [#allocation7], %s70_s11 }
  0x28   : > { %p699_p5 = pneg %p1085_p3 }
  0x2a   : > { %s1081_s16 = scalar_lea.hbm %s1489_s2, %s484_s12  ;;  %s702_s24 = scalar_lea.hbm %s1489_s2, 512 }
  0x2b   : > { %s697_s21 = scalar_lea.hbm %s1081_s16, 256  ;;  %p703_p8 = scmp.lt.u32.totalorder %s1081_s16, %s1489_s2 }
  0x2c   : > { %p698_p4 = scmp.ne.s32.totalorder %s1081_s16, %s697_s21  ;;  %p704_p9 = scmp.lt.u32.totalorder %s702_s24, %s697_s21 }
  0x2d   : > { %p706_p11 = scmp.lt.u32.totalorder %s697_s21, %s1081_s16 }
  0x2e   : > { %p700_p6 = pnand %p699_p5, %p698_p4  ;;  %p705_p10 = por %p704_p9, %p703_p8 }
  0x30   : > { %p701_p7 = pneg %p700_p6  ;;  %p707_p12 = por %p706_p11, %p705_p10 }
  0x32   : > { %p708_p13 = pnand %p707_p12, %p701_p7 }
  0x34   : > { %711 = shalt.err (!%p708_p13)
}
  0x35   : > { %s712_s0 = scalar_lea.vmem %s1089_s18, 256  ;;  %s987_s4 = smov [#allocation6]  }
  0x36   : > { %p713_p0 = scmp.ne.s32.totalorder %s1089_s18, %s712_s0  ;;  %s717_s6 = sshll.u32 %s987_s4, 4  ;;  %s1113_s6 = int_to_ptr.vmem [resolvable:$false] %s717_s6 }
  0x37   : > { %s1116_s7 = scalar_lea.vmem %s1113_s6, 512  ;;  %p720_p6 = scmp.lt.s32.totalorder %s1089_s18, %s1113_s6 }
  0x38   : > { %p715_p2 = pnand %p713_p0, %p699_p5  ;;  %p721_p7 = scmp.lt.s32.totalorder %s1116_s7, %s712_s0 }
  0x3a   : > { %p716_p4 = pneg %p715_p2  ;;  %p722_p8 = por %p721_p7, %p720_p6 }
  0x3c   : > { %p723_p9 = pnand %p722_p8, %p716_p4 }
  0x3e   : > { %726 = shalt.err (!%p723_p9)
}
  0x3f   : > { %s988_s8 = smov 128   ;;  %s989_s11 = smov 8  }
  0x40   : > { %532 = dma.hbm_to_vmem [thread:$0]  (!%p1085_p3), %s1081_s16, 256, %s1089_s18, %s1091_s20, %s988_s8, %s988_s8, %s989_s11  }
  0x41   : > { %p1470_p5 = scmp.ge.s32.totalorder %s983_s30, 1  ;;  %s94_s12 = sand.u32 1, %s967_s27  }
  0x42   : > { %s1128_s13 = sshll.u32 %s94_s12, 4  ;;  %s95_s14 = scalar_lea.sflag [#allocation7], %s94_s12 }
  0x43   : > { %p534_p10 = pnand %p1470_p5, %p1068_p1  ;;  %s1468_s15 = scalar_lea.vmem [#allocation6], %s1128_s13 }
  0x45   : > { %934 = dma.done.wait (!%p534_p10), %s95_s14, 256  }
  0x46   : > { %936 = vsyncadd (!%p534_p10), %s95_s14, 4294967040  ;;  %s453_s16 = sshll.u32 %s975_s28, 1  ;;  %s1137_s17 = smul.u32 6, %s975_s28 }
  0x47   : > { %s537_s9 = scalar_select %p1470_p5, [#allocation5], [#allocation28] }
  0x48   : > { %s1143_s18 = scalar_select %p1470_p5, %s453_s16, 0 }
  0x49   : > { %s131_s19 = sshll.u32 %s1468_s15, 4  ;;  %s1165_s4 = sadd.s32 1, %s453_s16  ;;  %s1153_s19 = int_to_ptr.vmem [resolvable:$true] %s131_s19 }
  0x4a   : > { %s113_s20 = sld [smem:[%s537_s9 + %s1143_s18]]  ;;  %p735_p10 = scmp.lt.s32.totalorder %s1153_s19, %s1113_s6 }
  0x4b   : > { %s579_s21 = scalar_select %p1470_p5, [#allocation5], [#allocation40] }
  0x4c   : > { %s544_s22 = scalar_select %p1470_p5, [#allocation5], [#allocation30] }
  0x4d   : > { %s258_s23 = sld [smem:[%s579_s21 + %s1143_s18]] }
  0x4e   : > { %s1157_s24 = sld [smem:[%s544_s22 + %s1143_s18]] }
  0x4f   : > { %s551_s26 = scalar_select %p1470_p5, [#allocation5], [#allocation32] }
  0x50   : > { %p611_p1 = scmp.gt.s32.totalorder %s113_s20, 0 }
  0x51   : > { %s1163_s0 = sld [smem:[%s551_s26 + %s1143_s18]] }
  0x52   : > { %s494_s8 = scalar_select %p611_p1, [#allocation4], [#allocation22] }
  0x53   : > { %s495_s11 = scalar_select %p611_p1, %s1137_s17, 0 }
  0x54   : > { %s1556_s8 = smov (!%p1470_p5, %s494_s8), [#allocation29]  ;;  %p1174_p3 = pnand %p611_p1, %p1470_p5 }
  0x55   : > { %s1558_s11 = smov (!%p1470_p5, %s495_s11), 0  ;;  %p617_p11 = scmp.gt.s32.totalorder %s258_s23, 0 }
  0x56   : > { %s119_s14 = sld [smem:[%s1556_s8 + %s1558_s11]]  ;;  %p1471_p13 = scmp.gt.s32.totalorder %s1157_s24, 1 }
  0x57   : > { %p1180_p12 = pnand %p617_p11, %p1470_p5  ;;  %p1469_p0 = scmp.gt.s32.totalorder %s1163_s0, 2 }
  0x58   : > { %p1190_p2 = pnand %p1471_p13, %p1470_p5  ;;  %s727_s11 = scalar_lea.vmem %s1153_s19, 128 }
  0x59   : > { %s1492_s16 = scalar_select %p1180_p12, 1, 0 }
  0x5a   : > { %s1493_s9 = scalar_select %p1190_p2, 1, 0 }
  0x5b   : > { %s498_s20 = scalar_select %p1471_p13, [#allocation4], [#allocation23] }
  0x5c   : > { %s485_s21 = sshll.u32 %s119_s14, 7  ;;  %p1203_p4 = pnand %p1469_p0, %p1470_p5 }
  0x5d   : > { %s123_s23 = scalar_lea.hbm %s1466_s3, %s485_s21  ;;  %p1209_p6 = scmp.ne.s32.totalorder %s1153_s19, %s727_s11 }
  0x5e   : > { %s1494_s8 = scalar_select %p1203_p4, 1, 0 }
  0x5f   : > { %s1495_s15 = scalar_select %p1209_p6, 1, 0 }
  0x60   : > { %p729_p7 = pneg %p1174_p3  ;;  %p736_p1 = scmp.lt.s32.totalorder %s1116_s7, %s727_s11 }
  0x62   : > { %p730_p8 = pnand %p729_p7, %p1209_p6  ;;  %p1220_p11 = por %p736_p1, %p735_p10 }
  0x64   : > { %p731_p9 = pneg %p730_p8 }
  0x66   : > { %p738_p0 = pnand %p1220_p11, %p731_p9 }
  0x68   : > { %741 = shalt.err (!%p738_p0)  }
  0x69   : > { %s742_s21 = scalar_lea.hbm %s123_s23, 128  ;;  %s1229_s25 = scalar_lea.hbm %s1466_s3, 1024 }
  0x6a   : > { %p743_p5 = scmp.ne.s32.totalorder %s123_s23, %s742_s21  ;;  %p748_p8 = scmp.lt.u32.totalorder %s123_s23, %s1466_s3 }
  0x6b   : > { %p749_p10 = scmp.lt.u32.totalorder %s1229_s25, %s742_s21  ;;  %p751_p4 = scmp.lt.u32.totalorder %s742_s21, %s123_s23 }
  0x6c   : > { %p745_p13 = pnand %p743_p5, %p729_p7 }
  0x6d   : > { %p750_p1 = por %p749_p10, %p748_p8 }
  0x6e   : > { %p746_p12 = pneg %p745_p13 }
  0x6f   : > { %p752_p6 = por %p751_p4, %p750_p1 }
  0x71   : > { %p753_p9 = pnand %p752_p6, %p746_p12 }
  0x73   : > { %756 = shalt.err (!%p753_p9)  }
  0x74   : > { %543 = dma.vmem_to_hbm [thread:$0]  (!%p1174_p3), %s1153_s19, 128, %s123_s23, [#allocation2] }
  0x75   : > { %s1497_s2 = sadd.s32 1, %s1137_s17  ;;  %p1498_p5 = scmp.gt.s32.totalorder %s1157_s24, 1 }
  0x76   : > { %p1499_p12 = scmp.ge.s32.totalorder %s983_s30, 1  ;;  %p1501_p0 = scmp.gt.s32.totalorder %s1163_s0, 2 }
  0x77   : > { %s1560_s2 = smov (!%p1498_p5, %s1497_s2), 0  ;;  %s1502_s11 = sadd.s32 2, %s1137_s17 }
  0x78   : > { %s1562_s20 = smov (!%p1499_p12, %s498_s20), [#allocation31]  ;;  %p1500_p13 = pmov %p1499_p12 }
  0x79   : > { %s502_s28 = scalar_select %p1501_p0, [#allocation4], [#allocation24] }
  0x7a   : > { %s1564_s2 = smov (!%p1500_p13, %s1560_s2), 0  ;;  %p1503_p4 = pmov %p1501_p0 }
  0x7b   : > { %s142_s12 = sld [smem:[%s1562_s20 + %s1564_s2]]  ;;  %p1504_p6 = pmov %p1499_p12 }
  0x7c   : > { %s1566_s11 = smov (!%p1503_p4, %s1502_s11), 0  ;;  %s1507_s21 = scalar_lea.vmem [#allocation6], %s1128_s13 }
  0x7d   : > { %s1568_s28 = smov (!%p1504_p6, %s502_s28), [#allocation33]  ;;  %p1505_p7 = pmov %p1504_p6 }
  0x7e   : > { %p1506_p3 = pmov %p1504_p6  ;;  %s1260_s22 = scalar_lea.vmem %s1507_s21, 8 [#allocation6] }
  0x7f   : > { %s1570_s11 = smov (!%p1505_p7, %s1566_s11), 0  ;;  %s1263_s5 = smul.u32 3, %s1165_s4 }
  0x80   : > { %s558_s24 = scalar_select %p1506_p3, [#allocation5], [#allocation34] }
  0x81   : > { %s166_s23 = sld [smem:[%s1568_s28 + %s1570_s11]]  ;;  %s486_s26 = sshll.u32 %s142_s12, 7 }
  0x82   : > { %s146_s17 = scalar_lea.hbm %s1466_s3, %s486_s26  ;;  %s204_s0 = sshll.u32 %s1260_s22, 4  ;;  %s1311_s0 = int_to_ptr.vmem [resolvable:$true] %s204_s0 }
  0x83   : > { %p759_p8 = pneg %p1190_p2  ;;  %p1508_p10 = scmp.ne.s32.totalorder %s1495_s15, 0 }
  0x85   : > { %p760_p1 = pnand %p759_p8, %p1508_p10 }
  0x87   : > { %p761_p9 = pneg %p760_p1 }
  0x89   : > { %p768_p5 = pnand %p761_p9, %p1220_p11 }
  0x8b   : > { %771 = shalt.err (!%p768_p5)  }
  0x8c   : > { %s772_s13 = scalar_lea.hbm %s146_s17, 128  ;;  %p778_p4 = scmp.lt.u32.totalorder %s146_s17, %s1466_s3 }
  0x8d   : > { %p773_p12 = scmp.ne.s32.totalorder %s146_s17, %s772_s13  ;;  %p779_p6 = scmp.lt.u32.totalorder %s1229_s25, %s772_s13 }
  0x8e   : > { %p781_p3 = scmp.lt.u32.totalorder %s772_s13, %s146_s17 }
  0x8f   : > { %p775_p13 = pnand %p773_p12, %p759_p8  ;;  %p780_p7 = por %p779_p6, %p778_p4 }
  0x91   : > { %p776_p0 = pneg %p775_p13  ;;  %p782_p2 = por %p781_p3, %p780_p7 }
  0x93   : > { %p783_p10 = pnand %p782_p2, %p776_p0 }
  0x95   : > { %786 = shalt.err (!%p783_p10)  }
  0x96   : > { %p1509_p1 = scmp.ne.s32.totalorder %s1493_s9, 0  ;;  %p1510_p8 = scmp.ge.s32.totalorder %s983_s30, 1 }
  0x97   : > { %s487_s10 = sshll.u32 %s166_s23, 7  ;;  %p1512_p2 = scmp.ne.s32.totalorder %s1494_s8, 0 }
  0x98   : > { %550 = dma.vmem_to_hbm [thread:$0]  (!%p1509_p1), %s1153_s19, 128, %s146_s17, [#allocation2 + $0x1] }
  0x99   : > { %s1572_s4 = smov (!%p1510_p8, %s1165_s4), 0  ;;  %p1511_p9 = pmov %p1510_p8 }
  0x9a   : > { %s184_s28 = sld [smem:[%s558_s24 + %s1572_s4]]  ;;  %s170_s9 = scalar_lea.hbm %s1466_s3, %s487_s10 }
  0x9b   : > { %s565_s29 = scalar_select %p1511_p9, [#allocation5], [#allocation36] }
  0x9c   : > { %p789_p10 = pneg %p1512_p2  ;;  %p1513_p5 = scmp.ne.s32.totalorder %s1495_s15, 0 }
  0x9d   : > { %s1294_s21 = sld [smem:[%s565_s29 + %s1572_s4]] }
  0x9e   : > { %p790_p12 = pnand %p789_p10, %p1513_p5 }
  0xa0   : > { %p791_p13 = pneg %p790_p12 }
  0xa2   : > { %p798_p0 = pnand %p791_p13, %p1220_p11 }
  0xa4   : > { %801 = shalt.err (!%p798_p0)  }
  0xa5   : > { %s802_s26 = scalar_lea.hbm %s170_s9, 128  ;;  %p808_p3 = scmp.lt.u32.totalorder %s170_s9, %s1466_s3 }
  0xa6   : > { %p803_p4 = scmp.ne.s32.totalorder %s170_s9, %s802_s26  ;;  %p809_p1 = scmp.lt.u32.totalorder %s1229_s25, %s802_s26 }
  0xa7   : > { %p811_p9 = scmp.lt.u32.totalorder %s802_s26, %s170_s9 }
  0xa8   : > { %p805_p6 = pnand %p803_p4, %p789_p10  ;;  %p810_p8 = por %p809_p1, %p808_p3 }
  0xaa   : > { %p806_p7 = pneg %p805_p6  ;;  %p812_p2 = por %p811_p9, %p810_p8 }
  0xac   : > { %p813_p5 = pnand %p812_p2, %p806_p7 }
  0xae   : > { %816 = shalt.err (!%p813_p5)  }
  0xaf   : > { %p1514_p12 = scmp.ne.s32.totalorder %s1494_s8, 0  ;;  %s214_s15 = sadd.s32 1, %s1263_s5 }
  0xb0   : > { %p1515_p11 = scmp.ge.s32.totalorder %s983_s30, 1  ;;  %p614_p2 = scmp.gt.s32.totalorder %s184_s28, 0 }
  0xb1   : > { %557 = dma.vmem_to_hbm [thread:$0]  (!%p1514_p12), %s1153_s19, 128, %s170_s9, [#allocation2 + $0x2] }
  0xb2   : > { %s572_s8 = scalar_select %p1515_p11, [#allocation5], [#allocation38] }
  0xb3   : > { %p615_p10 = scmp.gt.s32.totalorder %s1294_s21, 1  ;;  %p1516_p13 = pmov %p1515_p11 }
  0xb4   : > { %s506_s14 = scalar_select %p614_p2, [#allocation4], [#allocation25] }
  0xb5   : > { %s507_s17 = scalar_select %p614_p2, %s1263_s5, 0 }
  0xb6   : > { %s1574_s14 = smov (!%p1516_p13, %s506_s14), [#allocation35]  ;;  %p1517_p0 = pmov %p1515_p11 }
  0xb7   : > { %s1335_s20 = sld [smem:[%s572_s8 + %s1572_s4]]  ;;  %s1578_s15 = smov (!%p615_p10, %s214_s15), 0 }
  0xb8   : > { %s1576_s17 = smov (!%p1517_p0, %s507_s17), 0  ;;  %p1518_p4 = pmov %p1517_p0 }
  0xb9   : > { %p1520_p7 = pmov %p1517_p0  ;;  %s190_s13 = sld [smem:[%s1574_s14 + %s1576_s17]] }
  0xba   : > { %p1324_p6 = pnand %p614_p2, %p1518_p4  ;;  %p1522_p1 = pmov %p1517_p0 }
  0xbb   : > { %p1330_p3 = pnand %p615_p10, %p1520_p7  ;;  %p1523_p8 = pmov %p1517_p0 }
  0xbc   : > { %s510_s2 = scalar_select %p615_p10, [#allocation4], [#allocation26] }
  0xbd   : > { %s1521_s22 = scalar_select %p1330_p3, 1, 0 }
  0xbe   : > { %s1580_s2 = smov (!%p1522_p1, %s510_s2), [#allocation37]  ;;  %s1582_s15 = smov (!%p1523_p8, %s1578_s15), 0 }
  0xbf   : > { %s488_s29 = sshll.u32 %s190_s13, 7  ;;  %s1344_s11 = sld [smem:[%s1580_s2 + %s1582_s15]] }
  0xc0   : > { %s195_s12 = scalar_lea.hbm %s1466_s3, %s488_s29  ;;  %s817_s9 = scalar_lea.vmem %s1311_s0, 128 }
  0xc1   : > { %p1348_p9 = scmp.ne.s32.totalorder %s1311_s0, %s817_s9  ;;  %p819_p5 = pneg %p1324_p6 }
  0xc2   : > { %p825_p2 = scmp.lt.s32.totalorder %s1311_s0, %s1113_s6  ;;  %p826_p10 = scmp.lt.s32.totalorder %s1116_s7, %s817_s9 }
  0xc3   : > { %s1524_s21 = scalar_select %p1348_p9, 1, 0 }
  0xc4   : > { %p820_p12 = pnand %p819_p5, %p1348_p9  ;;  %p1359_p13 = por %p826_p10, %p825_p2 }
  0xc6   : > { %p821_p11 = pneg %p820_p12 }
  0xc8   : > { %p828_p0 = pnand %p1359_p13, %p821_p11 }
  0xca   : > { %831 = shalt.err (!%p828_p0)  }
  0xcb   : > { %s832_s24 = scalar_lea.hbm %s195_s12, 128  ;;  %p838_p8 = scmp.lt.u32.totalorder %s195_s12, %s1466_s3 }
  0xcc   : > { %p833_p4 = scmp.ne.s32.totalorder %s195_s12, %s832_s24  ;;  %p839_p12 = scmp.lt.u32.totalorder %s1229_s25, %s832_s24 }
  0xcd   : > { %p841_p3 = scmp.lt.u32.totalorder %s832_s24, %s195_s12 }
  0xce   : > { %p835_p7 = pnand %p833_p4, %p819_p5  ;;  %p840_p9 = por %p839_p12, %p838_p8 }
  0xd0   : > { %p836_p1 = pneg %p835_p7  ;;  %p842_p2 = por %p841_p3, %p840_p9 }
  0xd2   : > { %p843_p10 = pnand %p842_p2, %p836_p1 }
  0xd4   : > { %846 = shalt.err (!%p843_p10)  }
  0xd5   : > { %564 = dma.vmem_to_hbm [thread:$0]  (!%p1324_p6), %s1311_s0, 128, %s195_s12, [#allocation2 + $0x3] }
  0xd6   : > { %p616_p5 = scmp.gt.s32.totalorder %s1335_s20, 2  ;;  %s239_s6 = sadd.s32 2, %s1263_s5 }
  0xd7   : > { %s489_s8 = sshll.u32 %s1344_s11, 7  ;;  %p1526_p3 = scmp.ge.s32.totalorder %s983_s30, 1 }
  0xd8   : > { %s514_s7 = scalar_select %p616_p5, [#allocation4], [#allocation27] }
  0xd9   : > { %s1584_s6 = smov (!%p616_p5, %s239_s6), 0  ;;  %s220_s13 = scalar_lea.hbm %s1466_s3, %s489_s8 }
  0xda   : > { %p1380_p9 = pnand %p616_p5, %p1526_p3  ;;  %p1528_p11 = scmp.ne.s32.totalorder %s1521_s22, 0 }
  0xdb   : > { %p1529_p4 = scmp.ne.s32.totalorder %s1524_s21, 0 }
  0xdc   : > { %s1527_s19 = scalar_select %p1380_p9, 1, 0 }
  0xdd   : > { %p849_p0 = pneg %p1528_p11 }
  0xdf   : > { %p850_p7 = pnand %p849_p0, %p1529_p4 }
  0xe1   : > { %p851_p1 = pneg %p850_p7 }
  0xe3   : > { %p858_p6 = pnand %p851_p1, %p1359_p13 }
  0xe5   : > { %861 = shalt.err (!%p858_p6)  }
  0xe6   : > { %s862_s5 = scalar_lea.hbm %s220_s13, 128  ;;  %p868_p10 = scmp.lt.u32.totalorder %s220_s13, %s1466_s3 }
  0xe7   : > { %p863_p8 = scmp.ne.s32.totalorder %s220_s13, %s862_s5  ;;  %p869_p5 = scmp.lt.u32.totalorder %s1229_s25, %s862_s5 }
  0xe8   : > { %p871_p9 = scmp.lt.u32.totalorder %s862_s5, %s220_s13 }
  0xe9   : > { %p865_p12 = pnand %p863_p8, %p849_p0  ;;  %p870_p3 = por %p869_p5, %p868_p10 }
  0xeb   : > { %p866_p2 = pneg %p865_p12  ;;  %p872_p11 = por %p871_p9, %p870_p3 }
  0xed   : > { %p873_p4 = pnand %p872_p11, %p866_p2 }
  0xef   : > { %876 = shalt.err (!%p873_p4)  }
  0xf0   : > { %p1530_p7 = scmp.ne.s32.totalorder %s1521_s22, 0  ;;  %p1531_p0 = scmp.ge.s32.totalorder %s983_s30, 1 }
  0xf1   : > { %p1533_p9 = scmp.ne.s32.totalorder %s1527_s19, 0  ;;  %p1534_p4 = scmp.ne.s32.totalorder %s1524_s21, 0 }
  0xf2   : > { %571 = dma.vmem_to_hbm [thread:$0]  (!%p1530_p7), %s1311_s0, 128, %s220_s13, [#allocation2 + $0x4] }
  0xf3   : > { %s1586_s7 = smov (!%p1531_p0, %s514_s7), [#allocation39]  ;;  %p1532_p1 = pmov %p1531_p0 }
  0xf4   : > { %p879_p11 = pneg %p1533_p9 }
  0xf5   : > { %s1588_s6 = smov (!%p1532_p1, %s1584_s6), 0 }
  0xf6   : > { %s240_s29 = sld [smem:[%s1586_s7 + %s1588_s6]]  ;;  %p880_p6 = pnand %p879_p11, %p1534_p4 }
  0xf8   : > { %p881_p8 = pneg %p880_p6 }
  0xfa   : > { %p888_p12 = pnand %p881_p8, %p1359_p13 }
  0xfc   : > { %s490_s10 = sshll.u32 %s240_s29, 7 }
  0xfd   : > { %s245_s11 = scalar_lea.hbm %s1466_s3, %s490_s10 }
  0xfe   : > { %891 = shalt.err (!%p888_p12)  }
  0xff   : > { %s892_s22 = scalar_lea.hbm %s245_s11, 128  ;;  %p898_p3 = scmp.lt.u32.totalorder %s245_s11, %s1466_s3 }
 0x100   : > { %p893_p2 = scmp.ne.s32.totalorder %s245_s11, %s892_s22  ;;  %p899_p7 = scmp.lt.u32.totalorder %s1229_s25, %s892_s22 }
 0x101   : > { %p901_p1 = scmp.lt.u32.totalorder %s892_s22, %s245_s11 }
 0x102   : > { %p895_p10 = pnand %p893_p2, %p879_p11  ;;  %p900_p0 = por %p899_p7, %p898_p3 }
 0x104   : > { %p896_p5 = pneg %p895_p10  ;;  %p902_p9 = por %p901_p1, %p900_p0 }
 0x106   : > { %p903_p4 = pnand %p902_p9, %p896_p5 }
 0x108   : > { %906 = shalt.err (!%p903_p4)  }
 0x109   : > { %p1535_p6 = scmp.ne.s32.totalorder %s1527_s19, 0  ;;  %p1536_p13 = scmp.ne.s32.totalorder %s1492_s16, 0 }
 0x10b   : > { %578 = dma.vmem_to_hbm [thread:$0]  (!%p1535_p6), %s1311_s0, 128, %s245_s11, [#allocation2 + $0x5] }
 0x10c   : > { %938 = dma.done.wait (!%p1536_p13), [#allocation2], 128 }
 0x10d   : > { %940 = vsyncadd (!%p1536_p13), [#allocation2], 4294967168  ;;  %p1537_p11 = scmp.ge.s32.totalorder %s983_s30, 1 }
 0x10f   : > { %s584_s25 = scalar_select %p1537_p11, [#allocation5], [#allocation41] }
 0x110   : > { %p1538_p12 = pmov %p1537_p11 }
 0x111   : > { %s269_s21 = sld [smem:[%s584_s25 + %s1143_s18]] }
 0x117   : > { %p618_p8 = scmp.gt.s32.totalorder %s269_s21, 1 }
 0x119   : > { %p586_p9 = pnand %p618_p8, %p1538_p12 }
 0x11b   : > { %942 = dma.done.wait (!%p586_p9), [#allocation2 + $0x1], 128 }
 0x11c   : > { %944 = vsyncadd (!%p586_p9), [#allocation2 + $0x1], 4294967168  ;;  %p1539_p2 = pmov %p1537_p11 }
 0x11e   : > { %s589_s0 = scalar_select %p1539_p2, [#allocation5], [#allocation42] }
 0x11f   : > { %p1540_p5 = pmov %p1539_p2 }
 0x120   : > { %s282_s26 = sld [smem:[%s589_s0 + %s1143_s18]] }
 0x126   : > { %p619_p10 = scmp.gt.s32.totalorder %s282_s26, 2 }
 0x128   : > { %p591_p3 = pnand %p619_p10, %p1540_p5 }
 0x12a   : > { %946 = dma.done.wait (!%p591_p3), [#allocation2 + $0x2], 128 }
 0x12b   : > { %948 = vsyncadd (!%p591_p3), [#allocation2 + $0x2], 4294967168  ;;  %p1541_p7 = pmov %p1539_p2  ;;  %p1542_p1 = pmov %p1539_p2 }
 0x12d   : > { %s594_s16 = scalar_select %p1541_p7, [#allocation5], [#allocation43] }
 0x12f   : > { %s295_s23 = sld [smem:[%s594_s16 + %s1572_s4]] }
 0x135   : > { %p620_p0 = scmp.gt.s32.totalorder %s295_s23, 0 }
 0x137   : > { %p596_p4 = pnand %p620_p0, %p1542_p1 }
 0x139   : > { %950 = dma.done.wait (!%p596_p4), [#allocation2 + $0x3], 128 }
 0x13a   : > { %952 = vsyncadd (!%p596_p4), [#allocation2 + $0x3], 4294967168  ;;  %p1543_p6 = pmov %p1542_p1  ;;  %p1544_p11 = pmov %p1542_p1 }
 0x13c   : > { %s599_s18 = scalar_select %p1543_p6, [#allocation5], [#allocation44] }
 0x13e   : > { %s307_s15 = sld [smem:[%s599_s18 + %s1572_s4]] }
 0x144   : > { %p621_p13 = scmp.gt.s32.totalorder %s307_s15, 1 }
 0x146   : > { %p601_p8 = pnand %p621_p13, %p1544_p11 }
 0x148   : > { %954 = dma.done.wait (!%p601_p8), [#allocation2 + $0x4], 128 }
 0x149   : > { %956 = vsyncadd (!%p601_p8), [#allocation2 + $0x4], 4294967168  ;;  %p1545_p12 = pmov %p1542_p1  ;;  %p1546_p2 = pmov %p1542_p1 }
 0x14b   : > { %s604_s6 = scalar_select %p1545_p12, [#allocation5], [#allocation45] }
 0x14d   : > { %s320_s7 = sld [smem:[%s604_s6 + %s1572_s4]] }
 0x153   : > { %p622_p9 = scmp.gt.s32.totalorder %s320_s7, 2 }
 0x155   : > { %p606_p10 = pnand %p622_p9, %p1546_p2 }
 0x157   : > { %958 = dma.done.wait (!%p606_p10), [#allocation2 + $0x5], 128 }
 0x158   : > { %960 = vsyncadd (!%p606_p10), [#allocation2 + $0x5], 4294967168  ;;  %s24_s30 = sadd.s32 1, %s983_s30   ;;  %s1547_s8 = sld [smem:[#allocation56_spill]] }
 0x159   : > { %p21_p5 = scmp.ge.s32.totalorder %s24_s30, 3   ;;  %s1548_s28 = sld [smem:[#allocation54_spill]] }
 0x15a   : > { %s1549_s29 = sld [smem:[#allocation55_spill]]  ;;  %s1550_s0 = smov %s967_s27 }
 0x15b   : > { %s1551_s27 = smov %s971_s1  ;;  %23 = sbr.rel (!%p21_p5) target bundleno = 26 (0x1a), region = 144 }
 0x15e   : > { %s1552_s1 = smov %s1547_s8 }
 0x162   :  { %333 = vsyncpa [#allocation7], 1 }
 0x163   :  { %335 = vsyncpa [#allocation7 + $0x1], 1 }
 0x164   :  { %336 = vsyncmov [#allocation2] }
 0x167   :  { %s337_s4 = vpop.sfrf %336 }
 0x168   :  { %p478_p3 = scmp.ne.s32.totalorder %s337_s4, 0 }
 0x16a   :  { %341 = shalt.err (%p478_p3)  }
 0x16b   :  { %343 = vsyncmov [#allocation2 + $0x1] }
 0x16e   :  { %s344_s14 = vpop.sfrf %343 }
 0x16f   :  { %p479_p7 = scmp.ne.s32.totalorder %s344_s14, 0 }
 0x171   :  { %348 = shalt.err (%p479_p7)  }
 0x172   :  { %350 = vsyncmov [#allocation2 + $0x2] }
 0x175   :  { %s351_s17 = vpop.sfrf %350 }
 0x176   :  { %p480_p0 = scmp.ne.s32.totalorder %s351_s17, 0 }
 0x178   :  { %355 = shalt.err (%p480_p0)  }
 0x179   :  { %357 = vsyncmov [#allocation2 + $0x3] }
 0x17c   :  { %s358_s13 = vpop.sfrf %357 }
 0x17d   :  { %p481_p1 = scmp.ne.s32.totalorder %s358_s13, 0 }
 0x17f   :  { %362 = shalt.err (%p481_p1)  }
 0x180   :  { %364 = vsyncmov [#allocation2 + $0x4] }
 0x183   :  { %s365_s30 = vpop.sfrf %364 }
 0x184   :  { %p482_p4 = scmp.ne.s32.totalorder %s365_s30, 0 }
 0x186   :  { %369 = shalt.err (%p482_p4)  }
 0x187   :  { %371 = vsyncmov [#allocation2 + $0x5] }
 0x18a   :  { %s372_s3 = vpop.sfrf %371 }
 0x18b   :  { %p483_p6 = scmp.ne.s32.totalorder %s372_s3, 0 }
 0x18d   :  { %376 = shalt.err (%p483_p6)  }

</bundles_post_ra>
